<compile_context>
chip_gen: v5e
topology: v5e:2x2
jax: 0.10.0
libtpu: 0.0.40
codegen_flags: <defaults>
</compile_context>

<pallas_src>
import functools

import jax
import jax.numpy as jnp
from jax.experimental import pallas as pl
from jax.experimental.pallas import tpu as pltpu


def _round_up(v, m):
    return ((v + m - 1) // m) * m


def _pad2d(a, rows, cols):
    return jnp.pad(a, ((0, rows - a.shape[0]), (0, cols - a.shape[1])))


def _vmem_limit_bytes(working_bytes):
    """Generation-aware VMEM limit: sized from the actual working set, capped at
    ~70% of physical VMEM (64 MiB/TC on v7x, 128 MiB on v5e/v6e)."""
    try:
        cap = int(pltpu.get_tpu_info().vmem_capacity_bytes)
    except Exception:  # pragma: no cover - conservative fallback (v7x per-TC)
        cap = 64 * 1024 * 1024
    want = 2 * int(working_bytes) + (4 << 20)          # 2x margin + scratch headroom
    return int(max(16 << 20, min(int(0.7 * cap), want)))


def _compiler_params(working_bytes, dims=None):
    kwargs = dict(vmem_limit_bytes=_vmem_limit_bytes(working_bytes))
    if dims is not None:
        kwargs["dimension_semantics"] = dims
    return pltpu.CompilerParams(**kwargs)


# --------------------------------------------------------------------------- #
# SAGEConv layer: out = [relu](lin_l(mean_j x_j) + lin_r(x_i))                 #
# Row-tiled over nodes; A streamed, h/weights resident.                        #
# --------------------------------------------------------------------------- #
def _sage_layer_kernel(a_ref, hfull_ref, hrow_ref, wl_ref, wr_ref, b_ref,
                       out_ref, *, relu, n_valid, tm):
    # Mean aggregation over neighbors for this row tile: [tm, Hin] f32 accum.
    agg = jnp.dot(a_ref[...], hfull_ref[...], preferred_element_type=jnp.float32)
    # Two dots accumulated in f32 (no concat buffer).
    out = (jnp.dot(agg.astype(jnp.bfloat16), wl_ref[...],
                   preferred_element_type=jnp.float32)
           + jnp.dot(hrow_ref[...], wr_ref[...],
                     preferred_element_type=jnp.float32)
           + b_ref[...])
    if relu:
        out = jnp.maximum(out, 0.0)
    # Mask padded node rows so they never carry relu(bias) garbage downstream.
    row = pl.program_id(0) * tm + jax.lax.broadcasted_iota(jnp.int32, out.shape, 0)
    out = jnp.where(row < n_valid, out, 0.0)
    out_ref[...] = out.astype(out_ref.dtype)


def _sage_layer(h_bf16, a_mean, w_l, w_r, b, *, relu, n_valid, tm):
    n_pad, h_in = h_bf16.shape
    h_out = w_l.shape[1]
    grid = (n_pad // tm,)

    flops = 2 * n_pad * n_pad * h_in + 2 * 2 * n_pad * h_in * h_out
    bytes_accessed = (n_pad * n_pad * 2            # A (bf16, streamed)
                      + 2 * n_pad * h_in * 2       # h (resident + row tiles)
                      + 2 * h_in * h_out * 2       # w_l, w_r
                      + h_out * 4                  # bias
                      + n_pad * h_out * 2)         # bf16 output
    working = (2 * tm * n_pad * 2                  # A row tiles, double-buffered
               + 2 * n_pad * h_in * 2              # resident h (double-buffered)
               + 2 * tm * h_in * 2                 # h root-row tiles
               + 2 * h_in * h_out * 2              # weights
               + h_out * 4                         # bias
               + 2 * tm * h_out * 2)               # output double buffer

    kernel = functools.partial(_sage_layer_kernel, relu=relu,
                               n_valid=n_valid, tm=tm)
    return pl.pallas_call(
        kernel,
        out_shape=jax.ShapeDtypeStruct((n_pad, h_out), jnp.bfloat16),
        grid_spec=pltpu.PrefetchScalarGridSpec(
            num_scalar_prefetch=0,
            grid=grid,
            in_specs=[
                pl.BlockSpec((tm, n_pad), lambda i: (i, 0)),     # A row tile (streamed)
                pl.BlockSpec((n_pad, h_in), lambda i: (0, 0)),   # full h, stays resident
                pl.BlockSpec((tm, h_in), lambda i: (i, 0)),      # h row tile (root term)
                pl.BlockSpec((h_in, h_out), lambda i: (0, 0)),   # w_l
                pl.BlockSpec((h_in, h_out), lambda i: (0, 0)),   # w_r
                pl.BlockSpec((1, h_out), lambda i: (0, 0)),      # bias
            ],
            out_specs=pl.BlockSpec((tm, h_out), lambda i: (i, 0)),
        ),
        compiler_params=_compiler_params(working, dims=("parallel",)),
        cost_estimate=pl.CostEstimate(flops=flops, transcendentals=0,
                                      bytes_accessed=bytes_accessed),
    )(a_mean, h_bf16, h_bf16, w_l, w_r, b)


# --------------------------------------------------------------------------- #
# Head: global_mean_pool (dense P matmul) -> [eval dropout = identity] -> Linear
# --------------------------------------------------------------------------- #
def _pool_head_kernel(p_ref, h_ref, wlin_ref, blin_ref, pool_ref, final_ref):
    pooled = jnp.dot(p_ref[...], h_ref[...], preferred_element_type=jnp.float32)
    pool_ref[...] = pooled
    # F.dropout(p=0.5, training=False) is identity in eval mode.
    # TODO(synk): train-mode dropout would use pltpu.prng_seed / prng_random_bits.
    final_ref[...] = (jnp.dot(pooled.astype(jnp.bfloat16), wlin_ref[...],
                              preferred_element_type=jnp.float32)
                      + blin_ref[...])


def _pool_head(p_mat, h3, wlin, blin):
    g_pad, n_pad = p_mat.shape
    h_pad = h3.shape[1]
    c_pad = wlin.shape[1]
    flops = 2 * g_pad * n_pad * h_pad + 2 * g_pad * h_pad * c_pad
    bytes_accessed = (g_pad * n_pad * 2 + n_pad * h_pad * 2 + h_pad * c_pad * 2
                      + c_pad * 4 + g_pad * h_pad * 4 + g_pad * c_pad * 4)
    vmem = pl.BlockSpec(memory_space=pltpu.MemorySpace.VMEM)
    # TODO(synk): for very large N, tile the contraction over rows of h3.
    return pl.pallas_call(
        _pool_head_kernel,
        out_shape=(jax.ShapeDtypeStruct((g_pad, h_pad), jnp.float32),
                   jax.ShapeDtypeStruct((g_pad, c_pad), jnp.float32)),
        in_specs=[vmem, vmem, vmem, vmem],
        out_specs=(vmem, vmem),
        compiler_params=_compiler_params(bytes_accessed),
        cost_estimate=pl.CostEstimate(flops=flops, transcendentals=0,
                                      bytes_accessed=bytes_accessed),
    )(p_mat, h3, wlin, blin)


# --------------------------------------------------------------------------- #
# Forward wrapper                                                              #
# --------------------------------------------------------------------------- #
def gcn_forward(x, edge_index, batch, params, num_graphs):
    N, F = x.shape
    H = params["w1l"].shape[1]
    C = params["wlin"].shape[1]

    F_pad = _round_up(F, 128)
    H_pad = _round_up(H, 128)
    C_pad = _round_up(C, 128)
    G_pad = _round_up(max(num_graphs, 16), 16)

    # Row tile for streaming A: 256 rows double-buffers nicely against the MXU
    # pass while bounding VMEM; tiny graphs use a single full-size tile.
    if N <= 256:
        tm = _round_up(max(N, 16), 16)
        N_pad = tm
    else:
        tm = 256
        N_pad = _round_up(N, tm)

    src = edge_index[0].astype(jnp.int32)
    dst = edge_index[1].astype(jnp.int32)

    # Mean-aggregation matrix: A[i, j] = (#edges j->i) / deg_in(i).
    # deg is built O(E) via scatter (not by summing the dense matrix).
    # TODO(synk): sparse scalar-prefetch gather path for large graphs.
    adj = jnp.zeros((N_pad, N_pad), jnp.float32).at[dst, src].add(1.0)
    deg = jnp.zeros((N_pad, 1), jnp.float32).at[dst].add(1.0)
    a_mean = (adj * (1.0 / jnp.maximum(deg, 1.0))).astype(jnp.bfloat16)

    # Mean-pooling matrix P[g, i] = 1/|graph g| if batch[i] == g.
    batch_pad = jnp.pad(batch.astype(jnp.int32), (0, N_pad - N),
                        constant_values=-1)
    onehot = (jnp.arange(G_pad, dtype=jnp.int32)[:, None]
              == batch_pad[None, :]).astype(jnp.float32)
    counts = onehot.sum(axis=1, keepdims=True)
    p_mat = (onehot / jnp.maximum(counts, 1.0)).astype(jnp.bfloat16)

    x_p = _pad2d(x.astype(jnp.float32), N_pad, F_pad).astype(jnp.bfloat16)

    def pw(w, rows, cols):
        return _pad2d(w, rows, cols).astype(jnp.bfloat16)

    w1l, w1r = pw(params["w1l"], F_pad, H_pad), pw(params["w1r"], F_pad, H_pad)
    w2l, w2r = pw(params["w2l"], H_pad, H_pad), pw(params["w2r"], H_pad, H_pad)
    w3l, w3r = pw(params["w3l"], H_pad, H_pad), pw(params["w3r"], H_pad, H_pad)
    b1 = _pad2d(params["b1"], 1, H_pad)
    b2 = _pad2d(params["b2"], 1, H_pad)
    b3 = _pad2d(params["b3"], 1, H_pad)
    wlin = pw(params["wlin"], H_pad, C_pad)
    blin = _pad2d(params["blin"], 1, C_pad)

    # conv1 + relu, conv2 + relu, conv3 (no relu)
    h1 = _sage_layer(x_p, a_mean, w1l, w1r, b1, relu=True, n_valid=N, tm=tm)
    h2 = _sage_layer(h1, a_mean, w2l, w2r, b2, relu=True, n_valid=N, tm=tm)
    h3 = _sage_layer(h2, a_mean, w3l, w3r, b3, relu=False, n_valid=N, tm=tm)

    pooled_p, final_p = _pool_head(p_mat, h3, wlin, blin)

    sage1 = h1[:N, :H].astype(jnp.float32)
    sage2 = h2[:N, :H].astype(jnp.float32)
    sage3 = h3[:N, :H].astype(jnp.float32)
    pooled = pooled_p[:num_graphs, :H]
    final = final_p[:num_graphs, :C]
    # Eval-mode dropout is identity: share the pooling array (no extra buffer).
    return {"sage1": sage1, "sage2": sage2, "sage3": sage3,
            "pooling": pooled, "dropout": pooled, "final": final}


def init_params(key, num_node_features, hidden_channels, num_classes):
    """Deterministic synthetic parameters (shapes match the PyTorch module).

    PyG SAGEConv has lin_l (aggregated neighbors, with bias) and lin_r (root
    features, no bias). Weights stored as [in, out]."""
    def uni(k, shape, fan_in):
        bound = 1.0 / jnp.sqrt(jnp.float32(fan_in))
        return jax.random.uniform(k, shape, jnp.float32, -bound, bound)

    ks = jax.random.split(key, 11)
    F_in, H, C = num_node_features, hidden_channels, num_classes
    return {
        "w1l": uni(ks[0], (F_in, H), F_in),
        "w1r": uni(ks[1], (F_in, H), F_in),
        "b1":  uni(ks[2], (1, H), F_in),
        "w2l": uni(ks[3], (H, H), H),
        "w2r": uni(ks[4], (H, H), H),
        "b2":  uni(ks[5], (1, H), H),
        "w3l": uni(ks[6], (H, H), H),
        "w3r": uni(ks[7], (H, H), H),
        "b3":  uni(ks[8], (1, H), H),
        "wlin": uni(ks[9], (H, C), H),
        "blin": uni(ks[10], (1, C), H),
    }


if __name__ == "__main__":
    key = jax.random.PRNGKey(0)
    k_x, k_p = jax.random.split(key)

    # Small synthetic problem: 2 graphs of 8 nodes each (N=16),
    # 8 node features, hidden=32, 4 classes.
    # NOTE: at this size the kernels are pure fixed overhead; batch many graphs
    # per call (thousands of nodes) before drawing performance conclusions.
    N_PER_GRAPH, NUM_GRAPHS = 8, 2
    N = N_PER_GRAPH * NUM_GRAPHS
    NUM_FEATURES, HIDDEN, NUM_CLASSES = 8, 32, 4

    x = jax.random.normal(k_x, (N, NUM_FEATURES), jnp.float32)

    # Bidirectional ring edges within each graph (deterministic).
    srcs, dsts = [], []
    for g in range(NUM_GRAPHS):
        base = g * N_PER_GRAPH
        for i in range(N_PER_GRAPH):
            a = base + i
            b = base + (i + 1) % N_PER_GRAPH
            srcs += [a, b]
            dsts += [b, a]
    edge_index = jnp.array([srcs, dsts], dtype=jnp.int32)
    batch = jnp.repeat(jnp.arange(NUM_GRAPHS, dtype=jnp.int32), N_PER_GRAPH)

    params = init_params(k_p, NUM_FEATURES, HIDDEN, NUM_CLASSES)

    outputs = gcn_forward(x, edge_index, batch, params, NUM_GRAPHS)
    jax.block_until_ready(outputs)

    assert outputs["sage1"].shape == (N, HIDDEN)
    assert outputs["sage2"].shape == (N, HIDDEN)
    assert outputs["sage3"].shape == (N, HIDDEN)
    assert outputs["pooling"].shape == (NUM_GRAPHS, HIDDEN)
    assert outputs["dropout"].shape == (NUM_GRAPHS, HIDDEN)
    assert outputs["final"].shape == (NUM_GRAPHS, NUM_CLASSES)
    print("KERNEL_OK")
</pallas_src>

<mosaic_0001>
module attributes {stable_mosaic.version = 11 : i64} {
  func.func @_sage_layer_kernel(%arg0: i32, %arg1: memref<16x16xbf16, #tpu.memory_space<vmem>>, %arg2: memref<16x128xbf16, #tpu.memory_space<vmem>>, %arg3: memref<16x128xbf16, #tpu.memory_space<vmem>>, %arg4: memref<128x128xbf16, #tpu.memory_space<vmem>>, %arg5: memref<128x128xbf16, #tpu.memory_space<vmem>>, %arg6: memref<1x128xf32, #tpu.memory_space<vmem>>, %arg7: memref<16x128xbf16, #tpu.memory_space<vmem>>) attributes {dimension_semantics = [#tpu.dimension_semantics<parallel>], iteration_bounds = array<i64: 1>, scalar_prefetch = 0 : i64, scratch_operands = 0 : i64, tpu.core_type = #tpu.core_type<tc>, window_params = [{transform_indices = @transform_0, window_bounds = array<i64: 16, 16>}, {pipeline_mode = #tpu.pipeline_mode<synchronous>, transform_indices = @transform_1, window_bounds = array<i64: 16, 128>}, {transform_indices = @transform_2, window_bounds = array<i64: 16, 128>}, {pipeline_mode = #tpu.pipeline_mode<synchronous>, transform_indices = @transform_3, window_bounds = array<i64: 128, 128>}, {pipeline_mode = #tpu.pipeline_mode<synchronous>, transform_indices = @transform_4, window_bounds = array<i64: 128, 128>}, {pipeline_mode = #tpu.pipeline_mode<synchronous>, transform_indices = @transform_5, window_bounds = array<i64: 1, 128>}, {transform_indices = @transform_6, window_bounds = array<i64: 16, 128>}]} {
    %c0 = arith.constant 0 : index
    %c0_0 = arith.constant 0 : index
    %0 = vector.load %arg1[%c0, %c0_0] : memref<16x16xbf16, #tpu.memory_space<vmem>>, vector<16x16xbf16>
    %c0_1 = arith.constant 0 : index
    %c0_2 = arith.constant 0 : index
    %1 = vector.load %arg2[%c0_1, %c0_2] : memref<16x128xbf16, #tpu.memory_space<vmem>>, vector<16x128xbf16>
    %cst = arith.constant dense<0.000000e+00> : vector<16x128xf32>
    %2 = tpu.matmul %0, %1, %cst {dimension_numbers = #tpu.dot_dimension_numbers<[1], [0], [0], [1], [0, 0, 1, 1], [], []>} : vector<16x16xbf16>, vector<16x128xbf16>, vector<16x128xf32> -> vector<16x128xf32>
    %3 = arith.truncf %2 : vector<16x128xf32> to vector<16x128xbf16>
    %c0_3 = arith.constant 0 : index
    %c0_4 = arith.constant 0 : index
    %4 = vector.load %arg4[%c0_3, %c0_4] : memref<128x128xbf16, #tpu.memory_space<vmem>>, vector<128x128xbf16>
    %cst_5 = arith.constant dense<0.000000e+00> : vector<16x128xf32>
    %5 = tpu.matmul %3, %4, %cst_5 {dimension_numbers = #tpu.dot_dimension_numbers<[1], [0], [0], [1], [0, 0, 1, 1], [], []>} : vector<16x128xbf16>, vector<128x128xbf16>, vector<16x128xf32> -> vector<16x128xf32>
    %c0_6 = arith.constant 0 : index
    %c0_7 = arith.constant 0 : index
    %6 = vector.load %arg3[%c0_6, %c0_7] : memref<16x128xbf16, #tpu.memory_space<vmem>>, vector<16x128xbf16>
    %c0_8 = arith.constant 0 : index
    %c0_9 = arith.constant 0 : index
    %7 = vector.load %arg5[%c0_8, %c0_9] : memref<128x128xbf16, #tpu.memory_space<vmem>>, vector<128x128xbf16>
    %cst_10 = arith.constant dense<0.000000e+00> : vector<16x128xf32>
    %8 = tpu.matmul %6, %7, %cst_10 {dimension_numbers = #tpu.dot_dimension_numbers<[1], [0], [0], [1], [0, 0, 1, 1], [], []>} : vector<16x128xbf16>, vector<128x128xbf16>, vector<16x128xf32> -> vector<16x128xf32>
    %9 = arith.addf %5, %8 : vector<16x128xf32>
    %c0_11 = arith.constant 0 : index
    %c0_12 = arith.constant 0 : index
    %10 = vector.load %arg6[%c0_11, %c0_12] : memref<1x128xf32, #tpu.memory_space<vmem>>, vector<1x128xf32>
    %11 = vector.broadcast %10 : vector<1x128xf32> to vector<16x128xf32>
    %12 = arith.addf %9, %11 : vector<16x128xf32>
    %cst_13 = arith.constant 0.000000e+00 : f32
    %13 = vector.broadcast %cst_13 : f32 to vector<16x128xf32>
    %14 = arith.maximumf %12, %13 : vector<16x128xf32>
    %c16_i32 = arith.constant 16 : i32
    %15 = arith.muli %arg0, %c16_i32 : i32
    %16 = tpu.iota {dimensions = array<i32: 0>} : vector<16x128xi32>
    %17 = vector.broadcast %15 : i32 to vector<16x128xi32>
    %18 = arith.addi %17, %16 : vector<16x128xi32>
    %c16_i32_14 = arith.constant 16 : i32
    %19 = vector.broadcast %c16_i32_14 : i32 to vector<16x128xi32>
    %20 = arith.cmpi slt, %18, %19 : vector<16x128xi32>
    %cst_15 = arith.constant 0.000000e+00 : f32
    %21 = vector.broadcast %cst_15 : f32 to vector<16x128xf32>
    %22 = arith.select %20, %14, %21 : vector<16x128xi1>, vector<16x128xf32>
    %23 = arith.truncf %22 : vector<16x128xf32> to vector<16x128xbf16>
    %c0_16 = arith.constant 0 : index
    %c0_17 = arith.constant 0 : index
    %24 = vector.load %arg7[%c0_16, %c0_17] : memref<16x128xbf16, #tpu.memory_space<vmem>>, vector<16x128xbf16>
    tpu.vector_store %arg7[%c0_16, %c0_17], %23 {strides = array<i32>} : memref<16x128xbf16, #tpu.memory_space<vmem>>, vector<16x128xbf16>,
    return
  }
  func.func @transform_0(%arg0: i32) -> (i32, i32) {
    %c0_i32 = arith.constant 0 : i32
    %c0_i32_0 = arith.constant 0 : i32
    return %arg0, %c0_i32 : i32, i32
  }
  func.func @transform_1(%arg0: i32) -> (i32, i32) {
    %c0_i32 = arith.constant 0 : i32
    %c0_i32_0 = arith.constant 0 : i32
    %c0_i32_1 = arith.constant 0 : i32
    return %c0_i32, %c0_i32_0 : i32, i32
  }
  func.func @transform_2(%arg0: i32) -> (i32, i32) {
    %c0_i32 = arith.constant 0 : i32
    %c0_i32_0 = arith.constant 0 : i32
    return %arg0, %c0_i32 : i32, i32
  }
  func.func @transform_3(%arg0: i32) -> (i32, i32) {
    %c0_i32 = arith.constant 0 : i32
    %c0_i32_0 = arith.constant 0 : i32
    %c0_i32_1 = arith.constant 0 : i32
    return %c0_i32, %c0_i32_0 : i32, i32
  }
  func.func @transform_4(%arg0: i32) -> (i32, i32) {
    %c0_i32 = arith.constant 0 : i32
    %c0_i32_0 = arith.constant 0 : i32
    %c0_i32_1 = arith.constant 0 : i32
    return %c0_i32, %c0_i32_0 : i32, i32
  }
  func.func @transform_5(%arg0: i32) -> (i32, i32) {
    %c0_i32 = arith.constant 0 : i32
    %c0_i32_0 = arith.constant 0 : i32
    %c0_i32_1 = arith.constant 0 : i32
    return %c0_i32, %c0_i32_0 : i32, i32
  }
  func.func @transform_6(%arg0: i32) -> (i32, i32) {
    %c0_i32 = arith.constant 0 : i32
    %c0_i32_0 = arith.constant 0 : i32
    return %arg0, %c0_i32 : i32, i32
  }
}

</mosaic_0001>

<bundles_post_ra>
// kernel: tpu_custom_call.1
= control target key start
LH: loop header
LB: loop body
LE: loop exit
PB: predicated region body
PF: predicated region fallthrough
CT: control target
= control target key end

     0   :  { %11 = vsyncpa [#allocation3], 0  ;;  %s689_s0 = inlined_call_operand.hbm [shape: bf16[16,16], index: 0, kind: input, shape index: {}]   ;;  %s690_s1 = inlined_call_operand.hbm [shape: bf16[16,128], index: 1, kind: input, shape index: {}]   ;;  %s691_s2 = inlined_call_operand.hbm [shape: bf16[16,128], index: 2, kind: input, shape index: {}]   ;;  %s692_s3 = inlined_call_operand.hbm [shape: bf16[128,128], index: 3, kind: input, shape index: {}]   ;;  %s693_s4 = inlined_call_operand.hbm [shape: bf16[128,128], index: 4, kind: input, shape index: {}]   ;;  %s694_s5 = inlined_call_operand.vmem [shape: f32[1,128], index: 5, kind: input, shape index: {}]   ;;  %s695_s6 = inlined_call_operand.hbm [shape: bf16[16,128], index: 6, kind: output, shape index: {}]  }
   0x1   :  { %12 = vsyncpa [#allocation6], 0 }
   0x2   :  { %13 = vsyncpa [#allocation9], 0 }
   0x3   :  { %14 = vsyncpa [#allocation4], 0  ;;  %s32_s23 = sshll.u32 %s690_s1, 4  ;;  %s607_s24 = smov [#allocation5]   ;;  %s33_s23 = int_to_ptr.hbm [resolvable:$true] %s32_s23 }
   0x4   :  { %s34_s25 = sshll.u32 %s607_s24, 4  ;;  %s58_s28 = sshll.u32 %s692_s3, 4  ;;  %s35_s25 = int_to_ptr.vmem [resolvable:$true] %s34_s25  ;;  %s59_s28 = int_to_ptr.hbm [resolvable:$true] %s58_s28 }
   0x5   :  { %s608_s29 = smov 64   ;;  %s609_s30 = smov 4  }
   0x6   :  { %40 = dma.hbm_to_vmem [thread:$0]  %s33_s23, 128, %s35_s25, [#allocation6], %s608_s29, %s608_s29, %s609_s30  }
   0x7   :  { %s610_s7 = smov [#allocation8]   ;;  %s19_s1 = sshll.u32 %s689_s0, 4  ;;  %s20_s1 = int_to_ptr.hbm [resolvable:$true] %s19_s1 }
   0x8   :  { %s60_s8 = sshll.u32 %s610_s7, 4  ;;  %s45_s12 = sshll.u32 %s691_s2, 4  ;;  %s61_s8 = int_to_ptr.vmem [resolvable:$true] %s60_s8  ;;  %s46_s12 = int_to_ptr.hbm [resolvable:$true] %s45_s12 }
   0x9   :  { %66 = dma.hbm_to_vmem [thread:$0]  %s59_s28, 1024, %s61_s8, [#allocation9], %s608_s29, %s608_s29, %s609_s30  }
   0xa   :  { %s611_s13 = smov [#allocation2]   ;;  %s612_s15 = smov [#allocation7]  }
   0xb   :  { %s21_s14 = sshll.u32 %s611_s13, 4  ;;  %s47_s0 = sshll.u32 %s612_s15, 4  ;;  %s22_s14 = int_to_ptr.vmem [resolvable:$true] %s21_s14  ;;  %s48_s0 = int_to_ptr.vmem [resolvable:$true] %s47_s0 }
   0xc   :  { %27 = dma.hbm_to_vmem [thread:$0]  %s20_s1, 128, %s22_s14, [#allocation3], %s608_s29, %s608_s29, %s609_s30  }
   0xd   :  { %s71_s18 = sshll.u32 %s693_s4, 4  ;;  %s613_s2 = smov [#allocation10]   ;;  %s72_s18 = int_to_ptr.hbm [resolvable:$true] %s71_s18 }
   0xe   :  { %53 = dma.hbm_to_vmem [thread:$0]  %s46_s12, 128, %s48_s0, [#allocation6], %s608_s29, %s608_s29, %s609_s30  }
   0xf   :  { %s73_s19 = sshll.u32 %s613_s2, 4  ;;  %s74_s19 = int_to_ptr.vmem [resolvable:$true] %s73_s19 }
  0x10   :  { %79 = dma.hbm_to_vmem [thread:$0]  %s72_s18, 1024, %s74_s19, [#allocation9], %s608_s29, %s608_s29, %s609_s30  }
  0x11   :  { %599 = dma.done.wait [#allocation3], 128  }
  0x12   :  { %600 = vsyncadd [#allocation3], 4294967168 }
  0x13   :  { %601 = dma.done.wait [#allocation6], 256  }
  0x14   :  { %602 = vsyncadd [#allocation6], 4294967040 }
  0x15   :  { %603 = dma.done.wait [#allocation9], 2048  }
  0x16   :  { %604 = vsyncadd [#allocation9], 4294965248  ;;  %v423_v0 = vld [vmem:[#allocation5] sm:$0xff]  ;;  %v440_v1 = vld [vmem:[#allocation10 + $0x38] sm:$0xff]  ;;  %vm118_vm0 = vcmask 130048   ;;  %s614_s21 = smov [#allocation11]  }
  0x17   :  { %v422_v2 = vld [vmem:[#allocation2] sm:$0xff]  ;;  %v431_v3 = vld [vmem:[#allocation8 + $0x38] sm:$0xff]  ;;  %129 = vmatpush.bf16.msra.mxu0 %v423_v0  ;;  %225 = vmatpush.bf16.msra.mxu1 %v440_v1  ;;  %v439_v4 = vld [vmem:[#allocation10 + $0x30] sm:$0xff]  ;;  %s328_s22 = sshll.u32 %s614_s21, 4  ;;  %s330_s25 = sshll.u32 %s695_s6, 4  ;;  %s329_s22 = int_to_ptr.vmem [resolvable:$true] %s328_s22  ;;  %s331_s25 = int_to_ptr.hbm [resolvable:$true] %s330_s25 }
  0x18   :  { %287 = vmatpush.bf16.msra.mxu2 %v431_v3  ;;  %v430_v5 = vld [vmem:[#allocation8 + $0x30] sm:$0xff]  ;;  %v438_v6 = vld [vmem:[#allocation10 + $0x28] sm:$0xff]  ;;  %v437_v8 = vld [vmem:[#allocation10 + $0x20] sm:$0xff] }
  0x19   :  { %v429_v7 = vld [vmem:[#allocation8 + $0x28] sm:$0xff]  ;;  %v428_v9 = vld [vmem:[#allocation8 + $0x20] sm:$0xff]  ;;  %v436_v10 = vld [vmem:[#allocation10 + $0x18] sm:$0xff] }
  0x1a   :  { %353 = vmatmul.msk.bf16.vlgmr.msra.gmra.mxu0 %vm118_vm0, %v422_v2  ;;  %v427_v11 = vld [vmem:[#allocation8 + $0x18] sm:$0xff]  ;;  %v435_v12 = vld [vmem:[#allocation10 + $0x10] sm:$0xff]  ;;  %v434_v14 = vld [vmem:[#allocation10 + $0x8] sm:$0xff] }
  0x1b   :  { %226 = vmatpush.bf16.msra.mxu1 %v439_v4  ;;  %v426_v13 = vld [vmem:[#allocation8 + $0x10] sm:$0xff]  ;;  %v425_v15 = vld [vmem:[#allocation8 + $0x8] sm:$0xff]  ;;  %v433_v16 = vld [vmem:[#allocation10] sm:$0xff] }
  0x1c   :  { %288 = vmatpush.bf16.msra.mxu2 %v430_v5  ;;  %v424_v17 = vld [vmem:[#allocation8] sm:$0xff]  ;;  %v432_v18 = vld [vmem:[#allocation7] sm:$0xff]  ;;  %v454_v25 = vld [vmem:[%s694_s5] ss:$0 sm:$0xff] }
  0x1f   :  { %227 = vmatpush.bf16.msra.mxu1 %v438_v6 }
  0x20   :  { %289 = vmatpush.bf16.msra.mxu2 %v429_v7 }
  0x23   :  { %228 = vmatpush.bf16.msra.mxu1 %v437_v8 }
  0x24   :  { %290 = vmatpush.bf16.msra.mxu2 %v428_v9 }
  0x27   :  { %229 = vmatpush.bf16.msra.mxu1 %v436_v10 }
  0x28   :  { %291 = vmatpush.bf16.msra.mxu2 %v427_v11 }
  0x2b   :  { %230 = vmatpush.bf16.msra.mxu1 %v435_v12 }
  0x2c   :  { %292 = vmatpush.bf16.msra.mxu2 %v426_v13 }
  0x2f   :  { %231 = vmatpush.bf16.msra.mxu1 %v434_v14 }
  0x30   :  { %293 = vmatpush.bf16.msra.mxu2 %v425_v15 }
  0x33   :  { %232 = vmatpush.bf16.msra.mxu1 %v433_v16 }
  0x34   :  { %294 = vmatpush.bf16.msra.mxu2 %v424_v17 }
  0x36   :  { %233 = vmatmul.bf16.vlgmr.msra.gmra.mxu1 %v432_v18 }
  0x97   :  { %v131_v19 = vpop.f32.mrf.mxu0 }
  0x9f   :  { %v133_v20 = vpop.f32.mrf.mxu0 }
  0xa0   :  { %v136_v21 = vpack.c.bf16 %v133_v20, %v131_v19 }
  0xa2   :  { %295 = vmatmul.bf16.vlgmr.msra.gmra.mxu2 %v136_v21 }
  0xb3   :  { %v234_v22 = vpop.f32.mrf.mxu1 }
  0xbb   :  { %v236_v26 = vpop.f32.mrf.mxu1 }
 0x125   :  { %v296_v23 = vpop.f32.mrf.mxu2 }
 0x126   :  { %v297_v24 = vadd.f32 %v296_v23, %v234_v22 }
 0x128   :  { %v305_v28 = vadd.f32 %v454_v25, %v297_v24 }
 0x12a   :  { %v307_v31 = vmax.f32 %v305_v28, 0.0 }
 0x12d   :  { %v298_v27 = vpop.f32.mrf.mxu2 }
 0x12e   :  { %v299_v29 = vadd.f32 %v298_v27, %v236_v26 }
 0x130   :  { %v306_v30 = vadd.f32 %v454_v25, %v299_v29 }
 0x132   :  { %v308_v32 = vmax.f32 %v306_v30, 0.0 }
 0x134   :  { %v444_v33 = vpack.c.bf16 %v308_v32, %v307_v31 }
 0x136   :  { %445 = vst [vmem:[#allocation11] sm:$0xff] %v444_v33  }
 0x137   :  { %336 = dma.vmem_to_hbm [thread:$0]  %s329_s22, 128, %s331_s25, [#allocation4], %s608_s29, %s608_s29, %s609_s30  }
 0x138   :  { %605 = dma.done.wait [#allocation4], 128  }
 0x139   :  { %606 = vsyncadd [#allocation4], 4294967168 }
 0x13a   :  { %341 = vsyncpa [#allocation3], 1 }
 0x13b   :  { %342 = vsyncpa [#allocation6], 1 }
 0x13c   :  { %343 = vsyncpa [#allocation9], 1 }
 0x13d   :  { %344 = vsyncpa [#allocation4], 1 }

</bundles_post_ra>
